<compile_context>
chip_gen: v6e
topology: v6e:2x2x1
jax: 0.10.0
libtpu: 0.0.40
codegen_flags: <defaults>
</compile_context>

<pallas_src>
import jax
import jax.numpy as jnp
from jax.experimental import pallas as pl
from jax.experimental.pallas import tpu as pltpu


def _round_up(n, m):
    return (n + m - 1) // m * m


def _basenet_kernel_masked(x_ref, mask_ref, w1_ref, b1_ref, w2_ref, b2_ref, out_ref):
    # feature_extractor: masked input -> linear -> relu.
    # x / mask arrive as bf16 (half the HBM DMA); the elementwise multiply stays
    # packed bf16 on v6e/v7x VALUs (v5e promotes internally to f32 -- correct).
    xm = x_ref[...] * mask_ref[...]
    h = jnp.dot(xm, w1_ref[...], preferred_element_type=jnp.float32)
    h = jnp.maximum(h + b1_ref[...], 0.0)          # (1, Hp) bias broadcasts over rows
    # classifier: linear (f32 accumulation, bf16 MXU operands).
    y = jnp.dot(h.astype(jnp.bfloat16), w2_ref[...], preferred_element_type=jnp.float32)
    out_ref[...] = (y + b2_ref[...]).astype(out_ref.dtype)


def _basenet_kernel_nomask(x_ref, w1_ref, b1_ref, w2_ref, b2_ref, out_ref):
    h = jnp.dot(x_ref[...], w1_ref[...], preferred_element_type=jnp.float32)
    h = jnp.maximum(h + b1_ref[...], 0.0)
    y = jnp.dot(h.astype(jnp.bfloat16), w2_ref[...], preferred_element_type=jnp.float32)
    out_ref[...] = (y + b2_ref[...]).astype(out_ref.dtype)


def _vmem_budget_bytes():
    # Generation-aware VMEM budget: ~0.75x physical capacity
    # (v5e/v6e: 128 MiB -> 96 MiB; v7x: 64 MiB -> 48 MiB).
    try:
        cap = int(pltpu.get_tpu_info().vmem_capacity_bytes)
    except Exception:
        cap = 128 * 1024 * 1024
    return cap * 3 // 4


def basenet_forward(x, w1, b1, w2, b2, mask=None, *, block_b=512):
    """Fused BaseNet.forward as a single Pallas call.

    x:    (B, D) float32     mask: (B, D) or None
    w1:   (D, H)  b1: (1, H)
    w2:   (H, C)  b2: (1, C)
    returns (B, C) float32
    """
    B, D = x.shape
    H = w1.shape[1]
    C = w2.shape[1]

    # Lane-dense padding: feature / hidden / class dims to multiples of 128,
    # batch to a multiple of the (sublane-aligned) batch tile. Zero padding is
    # math-preserving; padded rows/cols are sliced off at the end.
    Dp = _round_up(D, 128)
    Hp = _round_up(H, 128)
    Cp = _round_up(C, 128)

    Bp = _round_up(B, 8)
    if Bp > block_b:
        tb = block_b
    elif Bp >= 16:
        # A single tile would leave the second v7x TensorCore idle under
        # dimension_semantics=("parallel",): split it in two.
        Bp = _round_up(Bp, 16)
        tb = Bp // 2
    else:
        tb = Bp

    budget = _vmem_budget_bytes()

    def vmem_estimate(tb_, weight_bufs):
        act_in = tb_ * Dp * 2 * (2 if mask is not None else 1)   # bf16 x (+ mask)
        act_out = tb_ * Cp * 4                                   # f32 output tile
        hidden = tb_ * Hp * 4                                    # f32 hidden temp
        weights = (Dp * Hp + Hp * Cp) * 2 * weight_bufs          # bf16 weights
        biases = (Hp + Cp) * 4 * weight_bufs
        return 2 * (act_in + act_out) + hidden + weights + biases  # 2x: pipeline bufs

    # Shrink the batch tile if double-buffered activations + resident weights
    # would blow the per-generation VMEM budget.
    while tb > 8 and vmem_estimate(tb, 1) > budget:
        tb = max(8, (tb // 2) // 8 * 8)
    Bp = _round_up(Bp, tb)
    # TODO(synk): if the bf16 weights alone exceed the budget (huge D/H/C,
    # especially v7x's 64 MiB VMEM), add K/N grid axes with an f32 VMEM
    # accumulator (pl.when init/finalize) instead of whole-weight residency.

    # bf16 activations/weights: halves HBM traffic and VMEM; f32 accumulation.
    x_p = jnp.pad(x.astype(jnp.bfloat16), ((0, Bp - B), (0, Dp - D)))
    w1_p = jnp.pad(w1, ((0, Dp - D), (0, Hp - H))).astype(jnp.bfloat16)
    b1_p = jnp.pad(b1, ((0, 0), (0, Hp - H))).astype(jnp.float32)
    w2_p = jnp.pad(w2, ((0, Hp - H), (0, Cp - C))).astype(jnp.bfloat16)
    b2_p = jnp.pad(b2, ((0, 0), (0, Cp - C))).astype(jnp.float32)

    grid = (Bp // tb,)
    x_spec = pl.BlockSpec((tb, Dp), lambda i: (i, 0))
    out_spec = pl.BlockSpec((tb, Cp), lambda i: (i, 0))

    def weight_specs(single_buffer):
        # Constant index_map blocks never change across the batch grid:
        # single-buffering halves their resident VMEM footprint.
        kw = {"pipeline_mode": pl.Buffered(1)} if single_buffer else {}
        return [
            pl.BlockSpec((Dp, Hp), lambda i: (0, 0), **kw),   # w1
            pl.BlockSpec((1, Hp), lambda i: (0, 0), **kw),    # b1
            pl.BlockSpec((Hp, Cp), lambda i: (0, 0), **kw),   # w2
            pl.BlockSpec((1, Cp), lambda i: (0, 0), **kw),    # b2
        ]

    flops = 2 * Bp * (Dp * Hp + Hp * Cp)
    bytes_accessed = (x_p.size * 2 + w1_p.size * 2 + w2_p.size * 2
                      + b1_p.size * 4 + b2_p.size * 4 + Bp * Cp * 4)

    if mask is not None:
        # Mask as bf16: exact for 0/1 masks, half the mask HBM traffic.
        mask_p = jnp.pad(mask.astype(jnp.bfloat16), ((0, Bp - B), (0, Dp - D)))
        bytes_accessed += mask_p.size * 2
        kernel = _basenet_kernel_masked
        args = (x_p, mask_p, w1_p, b1_p, w2_p, b2_p)
        act_specs = [x_spec, x_spec]
    else:
        # No mask: skip DMAing a dense all-ones array entirely.
        kernel = _basenet_kernel_nomask
        args = (x_p, w1_p, b1_p, w2_p, b2_p)
        act_specs = [x_spec]

    compiler_params = pltpu.CompilerParams(
        dimension_semantics=("parallel",),            # shard batch tiles across TCs
        vmem_limit_bytes=min(budget, 128 * 1024 * 1024),
    )
    cost = pl.CostEstimate(flops=flops, transcendentals=0,
                           bytes_accessed=bytes_accessed)

    def run(single_buffer):
        return pl.pallas_call(
            kernel,
            out_shape=jax.ShapeDtypeStruct((Bp, Cp), jnp.float32),
            grid=grid,
            in_specs=act_specs + weight_specs(single_buffer),
            out_specs=out_spec,
            compiler_params=compiler_params,
            cost_estimate=cost,
        )(*args)

    try:
        out_p = run(single_buffer=True)
    except Exception:
        # TODO(synk): pipeline_mode=pl.Buffered(1) not accepted on this
        # jax/libtpu combo; fall back to default double-buffered weight blocks.
        out_p = run(single_buffer=False)

    return out_p[:B, :C]


if __name__ == "__main__":
    # Small shapes that exercise every padding path (B->8, D/H/C->128).
    B, D, H, C = 6, 48, 96, 10
    key = jax.random.PRNGKey(0)
    kx, km, k1, k2, k3, k4 = jax.random.split(key, 6)

    x = jax.random.normal(kx, (B, D), dtype=jnp.float32)
    mask = (jax.random.uniform(km, (B, D)) > 0.2).astype(jnp.float32)
    w1 = jax.random.normal(k1, (D, H), dtype=jnp.float32) * 0.05
    b1 = jax.random.normal(k2, (1, H), dtype=jnp.float32) * 0.01
    w2 = jax.random.normal(k3, (H, C), dtype=jnp.float32) * 0.05
    b2 = jax.random.normal(k4, (1, C), dtype=jnp.float32) * 0.01

    # Masked path.
    out = jax.block_until_ready(basenet_forward(x, w1, b1, w2, b2, mask=mask))
    ref = jnp.maximum((x * mask) @ w1 + b1, 0.0) @ w2 + b2
    assert out.shape == (B, C)
    # bf16 MXU operands (f32 accumulation): loosened tolerance vs f32 reference.
    assert jnp.allclose(out, ref, atol=5e-2, rtol=5e-2), "masked path mismatch"

    # No-mask path (mask treated as all-ones without materializing it).
    out_nm = jax.block_until_ready(basenet_forward(x, w1, b1, w2, b2))
    ref_nm = jnp.maximum(x @ w1 + b1, 0.0) @ w2 + b2
    assert out_nm.shape == (B, C)
    assert jnp.allclose(out_nm, ref_nm, atol=5e-2, rtol=5e-2), "no-mask path mismatch"

    print("KERNEL_OK")
</pallas_src>

<mosaic_0001>
module attributes {stable_mosaic.version = 11 : i64} {
  func.func @_basenet_kernel_masked(%arg0: i32, %arg1: memref<8x128xbf16, #tpu.memory_space<vmem>>, %arg2: memref<8x128xbf16, #tpu.memory_space<vmem>>, %arg3: memref<128x128xbf16, #tpu.memory_space<vmem>>, %arg4: memref<1x128xf32, #tpu.memory_space<vmem>>, %arg5: memref<128x128xbf16, #tpu.memory_space<vmem>>, %arg6: memref<1x128xf32, #tpu.memory_space<vmem>>, %arg7: memref<8x128xf32, #tpu.memory_space<vmem>>) attributes {dimension_semantics = [#tpu.dimension_semantics<parallel>], iteration_bounds = array<i64: 1>, scalar_prefetch = 0 : i64, scratch_operands = 0 : i64, tpu.core_type = #tpu.core_type<tc>, window_params = [{transform_indices = @transform_0, window_bounds = array<i64: 8, 128>}, {transform_indices = @transform_1, window_bounds = array<i64: 8, 128>}, {pipeline_mode = #tpu.pipeline_mode<synchronous>, transform_indices = @transform_2, window_bounds = array<i64: 128, 128>}, {pipeline_mode = #tpu.pipeline_mode<synchronous>, transform_indices = @transform_3, window_bounds = array<i64: 1, 128>}, {pipeline_mode = #tpu.pipeline_mode<synchronous>, transform_indices = @transform_4, window_bounds = array<i64: 128, 128>}, {pipeline_mode = #tpu.pipeline_mode<synchronous>, transform_indices = @transform_5, window_bounds = array<i64: 1, 128>}, {transform_indices = @transform_6, window_bounds = array<i64: 8, 128>}]} {
    %c0 = arith.constant 0 : index
    %c0_0 = arith.constant 0 : index
    %0 = vector.load %arg1[%c0, %c0_0] : memref<8x128xbf16, #tpu.memory_space<vmem>>, vector<8x128xbf16>
    %c0_1 = arith.constant 0 : index
    %c0_2 = arith.constant 0 : index
    %1 = vector.load %arg2[%c0_1, %c0_2] : memref<8x128xbf16, #tpu.memory_space<vmem>>, vector<8x128xbf16>
    %2 = arith.mulf %0, %1 : vector<8x128xbf16>
    %c0_3 = arith.constant 0 : index
    %c0_4 = arith.constant 0 : index
    %3 = vector.load %arg3[%c0_3, %c0_4] : memref<128x128xbf16, #tpu.memory_space<vmem>>, vector<128x128xbf16>
    %cst = arith.constant dense<0.000000e+00> : vector<8x128xf32>
    %4 = tpu.matmul %2, %3, %cst {dimension_numbers = #tpu.dot_dimension_numbers<[1], [0], [0], [1], [0, 0, 1, 1], [], []>} : vector<8x128xbf16>, vector<128x128xbf16>, vector<8x128xf32> -> vector<8x128xf32>
    %c0_5 = arith.constant 0 : index
    %c0_6 = arith.constant 0 : index
    %5 = vector.load %arg4[%c0_5, %c0_6] : memref<1x128xf32, #tpu.memory_space<vmem>>, vector<1x128xf32>
    %6 = vector.broadcast %5 : vector<1x128xf32> to vector<8x128xf32>
    %7 = arith.addf %4, %6 : vector<8x128xf32>
    %cst_7 = arith.constant 0.000000e+00 : f32
    %8 = vector.broadcast %cst_7 : f32 to vector<8x128xf32>
    %9 = arith.maximumf %7, %8 : vector<8x128xf32>
    %10 = arith.truncf %9 : vector<8x128xf32> to vector<8x128xbf16>
    %c0_8 = arith.constant 0 : index
    %c0_9 = arith.constant 0 : index
    %11 = vector.load %arg5[%c0_8, %c0_9] : memref<128x128xbf16, #tpu.memory_space<vmem>>, vector<128x128xbf16>
    %cst_10 = arith.constant dense<0.000000e+00> : vector<8x128xf32>
    %12 = tpu.matmul %10, %11, %cst_10 {dimension_numbers = #tpu.dot_dimension_numbers<[1], [0], [0], [1], [0, 0, 1, 1], [], []>} : vector<8x128xbf16>, vector<128x128xbf16>, vector<8x128xf32> -> vector<8x128xf32>
    %c0_11 = arith.constant 0 : index
    %c0_12 = arith.constant 0 : index
    %13 = vector.load %arg6[%c0_11, %c0_12] : memref<1x128xf32, #tpu.memory_space<vmem>>, vector<1x128xf32>
    %14 = vector.broadcast %13 : vector<1x128xf32> to vector<8x128xf32>
    %15 = arith.addf %12, %14 : vector<8x128xf32>
    %c0_13 = arith.constant 0 : index
    %c0_14 = arith.constant 0 : index
    %16 = vector.load %arg7[%c0_13, %c0_14] : memref<8x128xf32, #tpu.memory_space<vmem>>, vector<8x128xf32>
    tpu.vector_store %arg7[%c0_13, %c0_14], %15 {strides = array<i32>} : memref<8x128xf32, #tpu.memory_space<vmem>>, vector<8x128xf32>,
    return
  }
  func.func @transform_0(%arg0: i32) -> (i32, i32) {
    %c0_i32 = arith.constant 0 : i32
    %c0_i32_0 = arith.constant 0 : i32
    return %arg0, %c0_i32 : i32, i32
  }
  func.func @transform_1(%arg0: i32) -> (i32, i32) {
    %c0_i32 = arith.constant 0 : i32
    %c0_i32_0 = arith.constant 0 : i32
    return %arg0, %c0_i32 : i32, i32
  }
  func.func @transform_2(%arg0: i32) -> (i32, i32) {
    %c0_i32 = arith.constant 0 : i32
    %c0_i32_0 = arith.constant 0 : i32
    %c0_i32_1 = arith.constant 0 : i32
    return %c0_i32, %c0_i32_0 : i32, i32
  }
  func.func @transform_3(%arg0: i32) -> (i32, i32) {
    %c0_i32 = arith.constant 0 : i32
    %c0_i32_0 = arith.constant 0 : i32
    %c0_i32_1 = arith.constant 0 : i32
    return %c0_i32, %c0_i32_0 : i32, i32
  }
  func.func @transform_4(%arg0: i32) -> (i32, i32) {
    %c0_i32 = arith.constant 0 : i32
    %c0_i32_0 = arith.constant 0 : i32
    %c0_i32_1 = arith.constant 0 : i32
    return %c0_i32, %c0_i32_0 : i32, i32
  }
  func.func @transform_5(%arg0: i32) -> (i32, i32) {
    %c0_i32 = arith.constant 0 : i32
    %c0_i32_0 = arith.constant 0 : i32
    %c0_i32_1 = arith.constant 0 : i32
    return %c0_i32, %c0_i32_0 : i32, i32
  }
  func.func @transform_6(%arg0: i32) -> (i32, i32) {
    %c0_i32 = arith.constant 0 : i32
    %c0_i32_0 = arith.constant 0 : i32
    return %arg0, %c0_i32 : i32, i32
  }
}

module attributes {stable_mosaic.version = 11 : i64} {
  func.func @_basenet_kernel_masked(%arg0: i32, %arg1: memref<8x128xbf16, #tpu.memory_space<vmem>>, %arg2: memref<8x128xbf16, #tpu.memory_space<vmem>>, %arg3: memref<128x128xbf16, #tpu.memory_space<vmem>>, %arg4: memref<1x128xf32, #tpu.memory_space<vmem>>, %arg5: memref<128x128xbf16, #tpu.memory_space<vmem>>, %arg6: memref<1x128xf32, #tpu.memory_space<vmem>>, %arg7: memref<8x128xf32, #tpu.memory_space<vmem>>) attributes {dimension_semantics = [#tpu.dimension_semantics<parallel>], iteration_bounds = array<i64: 1>, scalar_prefetch = 0 : i64, scratch_operands = 0 : i64, tpu.core_type = #tpu.core_type<tc>, window_params = [{transform_indices = @transform_0, window_bounds = array<i64: 8, 128>}, {transform_indices = @transform_1, window_bounds = array<i64: 8, 128>}, {pipeline_mode = #tpu.pipeline_mode<synchronous>, transform_indices = @transform_2, window_bounds = array<i64: 128, 128>}, {pipeline_mode = #tpu.pipeline_mode<synchronous>, transform_indices = @transform_3, window_bounds = array<i64: 1, 128>}, {pipeline_mode = #tpu.pipeline_mode<synchronous>, transform_indices = @transform_4, window_bounds = array<i64: 128, 128>}, {pipeline_mode = #tpu.pipeline_mode<synchronous>, transform_indices = @transform_5, window_bounds = array<i64: 1, 128>}, {transform_indices = @transform_6, window_bounds = array<i64: 8, 128>}]} {
    %c0 = arith.constant 0 : index
    %c0_0 = arith.constant 0 : index
    %0 = vector.load %arg1[%c0, %c0_0] : memref<8x128xbf16, #tpu.memory_space<vmem>>, vector<8x128xbf16>
    %c0_1 = arith.constant 0 : index
    %c0_2 = arith.constant 0 : index
    %1 = vector.load %arg2[%c0_1, %c0_2] : memref<8x128xbf16, #tpu.memory_space<vmem>>, vector<8x128xbf16>
    %2 = arith.mulf %0, %1 : vector<8x128xbf16>
    %c0_3 = arith.constant 0 : index
    %c0_4 = arith.constant 0 : index
    %3 = vector.load %arg3[%c0_3, %c0_4] : memref<128x128xbf16, #tpu.memory_space<vmem>>, vector<128x128xbf16>
    %cst = arith.constant dense<0.000000e+00> : vector<8x128xf32>
    %4 = tpu.matmul %2, %3, %cst {dimension_numbers = #tpu.dot_dimension_numbers<[1], [0], [0], [1], [0, 0, 1, 1], [], []>} : vector<8x128xbf16>, vector<128x128xbf16>, vector<8x128xf32> -> vector<8x128xf32>
    %c0_5 = arith.constant 0 : index
    %c0_6 = arith.constant 0 : index
    %5 = vector.load %arg4[%c0_5, %c0_6] : memref<1x128xf32, #tpu.memory_space<vmem>>, vector<1x128xf32>
    %6 = vector.broadcast %5 : vector<1x128xf32> to vector<8x128xf32>
    %7 = arith.addf %4, %6 : vector<8x128xf32>
    %cst_7 = arith.constant 0.000000e+00 : f32
    %8 = vector.broadcast %cst_7 : f32 to vector<8x128xf32>
    %9 = arith.maximumf %7, %8 : vector<8x128xf32>
    %10 = arith.truncf %9 : vector<8x128xf32> to vector<8x128xbf16>
    %c0_8 = arith.constant 0 : index
    %c0_9 = arith.constant 0 : index
    %11 = vector.load %arg5[%c0_8, %c0_9] : memref<128x128xbf16, #tpu.memory_space<vmem>>, vector<128x128xbf16>
    %cst_10 = arith.constant dense<0.000000e+00> : vector<8x128xf32>
    %12 = tpu.matmul %10, %11, %cst_10 {dimension_numbers = #tpu.dot_dimension_numbers<[1], [0], [0], [1], [0, 0, 1, 1], [], []>} : vector<8x128xbf16>, vector<128x128xbf16>, vector<8x128xf32> -> vector<8x128xf32>
    %c0_11 = arith.constant 0 : index
    %c0_12 = arith.constant 0 : index
    %13 = vector.load %arg6[%c0_11, %c0_12] : memref<1x128xf32, #tpu.memory_space<vmem>>, vector<1x128xf32>
    %14 = vector.broadcast %13 : vector<1x128xf32> to vector<8x128xf32>
    %15 = arith.addf %12, %14 : vector<8x128xf32>
    %c0_13 = arith.constant 0 : index
    %c0_14 = arith.constant 0 : index
    %16 = vector.load %arg7[%c0_13, %c0_14] : memref<8x128xf32, #tpu.memory_space<vmem>>, vector<8x128xf32>
    tpu.vector_store %arg7[%c0_13, %c0_14], %15 {strides = array<i32>} : memref<8x128xf32, #tpu.memory_space<vmem>>, vector<8x128xf32>,
    return
  }
  func.func @transform_0(%arg0: i32) -> (i32, i32) {
    %c0_i32 = arith.constant 0 : i32
    %c0_i32_0 = arith.constant 0 : i32
    return %arg0, %c0_i32 : i32, i32
  }
  func.func @transform_1(%arg0: i32) -> (i32, i32) {
    %c0_i32 = arith.constant 0 : i32
    %c0_i32_0 = arith.constant 0 : i32
    return %arg0, %c0_i32 : i32, i32
  }
  func.func @transform_2(%arg0: i32) -> (i32, i32) {
    %c0_i32 = arith.constant 0 : i32
    %c0_i32_0 = arith.constant 0 : i32
    %c0_i32_1 = arith.constant 0 : i32
    return %c0_i32, %c0_i32_0 : i32, i32
  }
  func.func @transform_3(%arg0: i32) -> (i32, i32) {
    %c0_i32 = arith.constant 0 : i32
    %c0_i32_0 = arith.constant 0 : i32
    %c0_i32_1 = arith.constant 0 : i32
    return %c0_i32, %c0_i32_0 : i32, i32
  }
  func.func @transform_4(%arg0: i32) -> (i32, i32) {
    %c0_i32 = arith.constant 0 : i32
    %c0_i32_0 = arith.constant 0 : i32
    %c0_i32_1 = arith.constant 0 : i32
    return %c0_i32, %c0_i32_0 : i32, i32
  }
  func.func @transform_5(%arg0: i32) -> (i32, i32) {
    %c0_i32 = arith.constant 0 : i32
    %c0_i32_0 = arith.constant 0 : i32
    %c0_i32_1 = arith.constant 0 : i32
    return %c0_i32, %c0_i32_0 : i32, i32
  }
  func.func @transform_6(%arg0: i32) -> (i32, i32) {
    %c0_i32 = arith.constant 0 : i32
    %c0_i32_0 = arith.constant 0 : i32
    return %arg0, %c0_i32 : i32, i32
  }
}

</mosaic_0001>

<bundles_post_ra>
// kernel: tpu_custom_call.1
= control target key start
LH: loop header
LB: loop body
LE: loop exit
PB: predicated region body
PF: predicated region fallthrough
CT: control target
= control target key end

     0   :  { %11 = vsyncpa [#allocation3], 0  ;;  %s595_s0 = inlined_call_operand.hbm [shape: bf16[8,128], index: 0, kind: input, shape index: {}]   ;;  %s596_s1 = inlined_call_operand.hbm [shape: bf16[8,128], index: 1, kind: input, shape index: {}]   ;;  %s597_s2 = inlined_call_operand.hbm [shape: bf16[128,128], index: 2, kind: input, shape index: {}]   ;;  %s598_s3 = inlined_call_operand.vmem [shape: f32[1,128], index: 3, kind: input, shape index: {}]   ;;  %s599_s4 = inlined_call_operand.hbm [shape: bf16[128,128], index: 4, kind: input, shape index: {}]   ;;  %s600_s5 = inlined_call_operand.vmem [shape: f32[1,128], index: 5, kind: input, shape index: {}]   ;;  %s601_s6 = inlined_call_operand.hbm [shape: f32[8,128], index: 6, kind: output, shape index: {}]  }
   0x1   :  { %12 = vsyncpa [#allocation6], 0 }
   0x2   :  { %13 = vsyncpa [#allocation9], 0 }
   0x3   :  { %14 = vsyncpa [#allocation4], 0  ;;  %s530_s21 = smov [#allocation5]   ;;  %s531_s23 = smov [#allocation2]  }
   0x4   :  { %s31_s22 = sshll.u32 %s530_s21, 4  ;;  %s21_s24 = sshll.u32 %s531_s23, 4  ;;  %s32_s22 = int_to_ptr.vmem [resolvable:$true] %s31_s22  ;;  %s22_s24 = int_to_ptr.vmem [resolvable:$true] %s21_s24 }
   0x5   :  { %s430_s25 = scalar_lea.vmem %s32_s22, 64  ;;  %p435_p1 = scmp.lt.s32.totalorder %s32_s22, %s32_s22 }
   0x6   :  { %p431_p0 = scmp.ne.s32.totalorder %s32_s22, %s430_s25  ;;  %p436_p2 = scmp.lt.s32.totalorder %s430_s25, %s430_s25 }
   0x8   :  { %p437_p3 = por %p436_p2, %p435_p1 }
   0xa   :  { %p438_p4 = pnand %p437_p3, %p431_p0 }
   0xc   :  { %441 = shalt.err (!%p438_p4)
}
   0xd   :  { %34 = dma.hbm_to_vmem [thread:$0]  %s596_s1, 64, %s32_s22, [#allocation6]  }
   0xe   :  { %s450_s28 = scalar_lea.vmem %s22_s24, 64  ;;  %p455_p6 = scmp.lt.s32.totalorder %s22_s24, %s22_s24 }
   0xf   :  { %p451_p5 = scmp.ne.s32.totalorder %s22_s24, %s450_s28  ;;  %p456_p7 = scmp.lt.s32.totalorder %s450_s28, %s450_s28 }
  0x11   :  { %p457_p8 = por %p456_p7, %p455_p6 }
  0x13   :  { %p458_p9 = pnand %p457_p8, %p451_p5 }
  0x15   :  { %461 = shalt.err (!%p458_p9)
}
  0x16   :  { %24 = dma.hbm_to_vmem [thread:$0]  %s595_s0, 64, %s22_s24, [#allocation3]  }
  0x17   :  { %s532_s7 = smov [#allocation7]  }
  0x18   :  { %s40_s8 = sshll.u32 %s532_s7, 4  ;;  %s41_s8 = int_to_ptr.vmem [resolvable:$true] %s40_s8 }
  0x19   :  { %s470_s9 = scalar_lea.vmem %s41_s8, 1024  ;;  %p475_p11 = scmp.lt.s32.totalorder %s41_s8, %s41_s8 }
  0x1a   :  { %p471_p10 = scmp.ne.s32.totalorder %s41_s8, %s470_s9  ;;  %p476_p12 = scmp.lt.s32.totalorder %s470_s9, %s470_s9 }
  0x1c   :  { %p477_p13 = por %p476_p12, %p475_p11 }
  0x1e   :  { %p478_p0 = pnand %p477_p13, %p471_p10 }
  0x20   :  { %481 = shalt.err (!%p478_p0)
}
  0x21   :  { %s533_s1 = smov 64   ;;  %s534_s10 = smov 4  }
  0x22   :  { %46 = dma.hbm_to_vmem [thread:$0]  %s597_s2, 1024, %s41_s8, [#allocation6], %s533_s1, %s533_s1, %s534_s10  }
  0x23   :  { %s535_s13 = smov [#allocation8]  }
  0x24   :  { %s54_s14 = sshll.u32 %s535_s13, 4  ;;  %s55_s14 = int_to_ptr.vmem [resolvable:$true] %s54_s14 }
  0x25   :  { %s490_s0 = scalar_lea.vmem %s55_s14, 1024  ;;  %p495_p2 = scmp.lt.s32.totalorder %s55_s14, %s55_s14 }
  0x26   :  { %p491_p1 = scmp.ne.s32.totalorder %s55_s14, %s490_s0  ;;  %p496_p3 = scmp.lt.s32.totalorder %s490_s0, %s490_s0 }
  0x28   :  { %p497_p4 = por %p496_p3, %p495_p2 }
  0x2a   :  { %p498_p5 = pnand %p497_p4, %p491_p1 }
  0x2c   :  { %501 = shalt.err (!%p498_p5)
}
  0x2d   :  { %60 = dma.hbm_to_vmem [thread:$0]  %s599_s4, 1024, %s55_s14, [#allocation9], %s533_s1, %s533_s1, %s534_s10  }
  0x2e   :  { %522 = dma.done.wait [#allocation3], 64  }
  0x2f   :  { %523 = vsyncadd [#allocation3], 4294967232 }
  0x30   :  { %524 = dma.done.wait [#allocation6], 1088  }
  0x31   :  { %525 = vsyncadd [#allocation6], 4294966208 }
  0x32   :  { %526 = dma.done.wait [#allocation9], 1024  }
  0x33   :  { %527 = vsyncadd [#allocation9], 4294966272  ;;  %v536_v0 = vmov 0.0   ;;  %vm537_vm0 = vmmov 0   ;;  %v406_v1 = vld [vmem:[#allocation7 + $0x38] sm:$0xff]   ;;  %v407_v2 = vld [vmem:[#allocation7 + $0x30] sm:$0xff]  }
  0x34   :  { %357 = vmatprep.subr.bf16.mxu0 %v536_v0  ;;  %373 = vmatprep.mubr.msk.bf16.mxu0 %vm537_vm0, %v536_v0  ;;  %v408_v3 = vld [vmem:[#allocation7 + $0x28] sm:$0xff]   ;;  %v414_v4 = vld [vmem:[#allocation8 + $0x38] sm:$0xff]   ;;  %v409_v5 = vld [vmem:[#allocation7 + $0x20] sm:$0xff]   ;;  %s538_s19 = smov [#allocation10]  }
  0x35   :  { %377 = vmatprep.subr.bf16.mxu1 %v536_v0  ;;  %393 = vmatprep.mubr.msk.bf16.mxu1 %vm537_vm0, %v536_v0  ;;  %v415_v6 = vld [vmem:[#allocation8 + $0x30] sm:$0xff]   ;;  %v410_v7 = vld [vmem:[#allocation7 + $0x18] sm:$0xff]   ;;  %v416_v8 = vld [vmem:[#allocation8 + $0x28] sm:$0xff]   ;;  %s310_s20 = sshll.u32 %s538_s19, 4  ;;  %s311_s20 = int_to_ptr.vmem [resolvable:$true] %s310_s20 }
  0x36   :  { %358 = vmatpush3.bf16.msra.mxu0 %v406_v1  ;;  %378 = vmatpush3.bf16.msra.mxu1 %v414_v4  ;;  %v411_v9 = vld [vmem:[#allocation7 + $0x10] sm:$0xff]   ;;  %v417_v10 = vld [vmem:[#allocation8 + $0x20] sm:$0xff]   ;;  %v412_v11 = vld [vmem:[#allocation7 + $0x8] sm:$0xff]   ;;  %p507_p7 = scmp.lt.s32.totalorder %s311_s20, %s311_s20 }
  0x37   :  { %359 = vmatprep.subr.bf16.mxu0 %v536_v0  ;;  %379 = vmatprep.subr.bf16.mxu1 %v536_v0  ;;  %v418_v12 = vld [vmem:[#allocation8 + $0x18] sm:$0xff]   ;;  %v413_v13 = vld [vmem:[#allocation7] sm:$0xff]   ;;  %v419_v16 = vld [vmem:[#allocation8 + $0x10] sm:$0xff]  }
  0x38   :  { %v76_v14 = vld [vmem:[#allocation2] sm:$0xf]  ;;  %v77_v15 = vld [vmem:[#allocation5] sm:$0xf]  ;;  %v420_v18 = vld [vmem:[#allocation8 + $0x8] sm:$0xff]  }
  0x39   :  { %v78_v17 = vmul.bf16 %v77_v15, %v76_v14  ;;  %v421_v19 = vld [vmem:[#allocation8] sm:$0xff]   ;;  %v321_v20 = vld [vmem:[%s598_s3] ss:$0 sm:$0xff]  ;;  %s502_s3 = scalar_lea.vmem %s311_s20, 128 }
  0x3a   :  { %360 = vmatpush3.bf16.msra.mxu0 %v407_v2  ;;  %380 = vmatpush3.bf16.msra.mxu1 %v415_v6  ;;  %v330_v28 = vld [vmem:[%s600_s5] ss:$0 sm:$0xff]  ;;  %p503_p6 = scmp.ne.s32.totalorder %s311_s20, %s502_s3  ;;  %p508_p8 = scmp.lt.s32.totalorder %s502_s3, %s502_s3 }
  0x3b   :  { %361 = vmatprep.subr.bf16.mxu0 %v536_v0  ;;  %381 = vmatprep.subr.bf16.mxu1 %v536_v0 }
  0x3c   :  { %p509_p9 = por %p508_p8, %p507_p7 }
  0x3e   :  { %362 = vmatpush3.bf16.msra.mxu0 %v408_v3  ;;  %382 = vmatpush3.bf16.msra.mxu1 %v416_v8  ;;  %p510_p10 = pnand %p509_p9, %p503_p6 }
  0x3f   :  { %363 = vmatprep.subr.bf16.mxu0 %v536_v0  ;;  %383 = vmatprep.subr.bf16.mxu1 %v536_v0 }
  0x42   :  { %364 = vmatpush3.bf16.msra.mxu0 %v409_v5  ;;  %384 = vmatpush3.bf16.msra.mxu1 %v417_v10 }
  0x43   :  { %365 = vmatprep.subr.bf16.mxu0 %v536_v0  ;;  %385 = vmatprep.subr.bf16.mxu1 %v536_v0 }
  0x46   :  { %366 = vmatpush3.bf16.msra.mxu0 %v410_v7  ;;  %386 = vmatpush3.bf16.msra.mxu1 %v418_v12 }
  0x47   :  { %367 = vmatprep.subr.bf16.mxu0 %v536_v0  ;;  %387 = vmatprep.subr.bf16.mxu1 %v536_v0 }
  0x4a   :  { %368 = vmatpush3.bf16.msra.mxu0 %v411_v9  ;;  %388 = vmatpush3.bf16.msra.mxu1 %v419_v16 }
  0x4b   :  { %369 = vmatprep.subr.bf16.mxu0 %v536_v0  ;;  %389 = vmatprep.subr.bf16.mxu1 %v536_v0 }
  0x4e   :  { %370 = vmatpush3.bf16.msra.mxu0 %v412_v11  ;;  %390 = vmatpush3.bf16.msra.mxu1 %v420_v18 }
  0x4f   :  { %371 = vmatprep.subr.bf16.mxu0 %v536_v0  ;;  %391 = vmatprep.subr.bf16.mxu1 %v536_v0 }
  0x52   :  { %372 = vmatpush3.bf16.msra.mxu0 %v413_v13  ;;  %392 = vmatpush3.bf16.msra.mxu1 %v421_v19 }
  0x55   :  { %374 = vmatmul.mubr.bf16.vlgmr.msra.gmra.mxu0 %v78_v17 }
 0x115   :  { %v184_v21 = vpop.f32.mrf.mxu0 }
 0x116   :  { %v185_v22 = vadd.f32 %v321_v20, %v184_v21 }
 0x117   :  { %v375_v23 = vpop.f32.mrf.mxu0 }
 0x118   :  { %v190_v24 = vmax.f32 %v185_v22, 0.0 }
 0x119   :  { %v187_v25 = vpop.f32.mrf.mxu0 }
 0x11a   :  { %v191_v26 = vpack.c.bf16 %v190_v24, %v190_v24 }
 0x11b   :  { %v376_v27 = vpop.f32.mrf.mxu0 }
 0x11c   :  { %394 = vmatmul.mubr.bf16.vlgmr.msra.gmra.mxu1 %v191_v26 }
 0x1dc   :  { %v297_v29 = vpop.f32.mrf.mxu1 }
 0x1dd   :  { %v298_v30 = vadd.f32 %v330_v28, %v297_v29 }
 0x1de   :  { %v395_v31 = vpop.f32.mrf.mxu1 }
 0x1df   :  { %303 = vst [vmem:[#allocation10] sm:$0xff] %v298_v30 }
 0x1e0   :  { %v300_v32 = vpop.f32.mrf.mxu1 }
 0x1e1   :  { %513 = shalt.err (!%p510_p10)
}
 0x1e2   :  { %313 = dma.vmem_to_hbm [thread:$0]  %s311_s20, 128, %s601_s6, [#allocation4]   ;;  %v396_v33 = vpop.f32.mrf.mxu1 }
 0x1e3   :  { %528 = dma.done.wait [#allocation4], 128  }
 0x1e4   :  { %529 = vsyncadd [#allocation4], 4294967168 }
 0x1e5   :  { %317 = vsyncpa [#allocation3], 1 }
 0x1e6   :  { %318 = vsyncpa [#allocation6], 1 }
 0x1e7   :  { %319 = vsyncpa [#allocation9], 1 }
 0x1e8   :  { %320 = vsyncpa [#allocation4], 1 }

// kernel: tpu_custom_call.1
= control target key start
LH: loop header
LB: loop body
LE: loop exit
PB: predicated region body
PF: predicated region fallthrough
CT: control target
= control target key end

     0   :  { %11 = vsyncpa [#allocation3], 0  ;;  %s595_s0 = inlined_call_operand.hbm [shape: bf16[8,128], index: 0, kind: input, shape index: {}]   ;;  %s596_s1 = inlined_call_operand.hbm [shape: bf16[8,128], index: 1, kind: input, shape index: {}]   ;;  %s597_s2 = inlined_call_operand.hbm [shape: bf16[128,128], index: 2, kind: input, shape index: {}]   ;;  %s598_s3 = inlined_call_operand.vmem [shape: f32[1,128], index: 3, kind: input, shape index: {}]   ;;  %s599_s4 = inlined_call_operand.hbm [shape: bf16[128,128], index: 4, kind: input, shape index: {}]   ;;  %s600_s5 = inlined_call_operand.vmem [shape: f32[1,128], index: 5, kind: input, shape index: {}]   ;;  %s601_s6 = inlined_call_operand.hbm [shape: f32[8,128], index: 6, kind: output, shape index: {}]  }
   0x1   :  { %12 = vsyncpa [#allocation6], 0 }
   0x2   :  { %13 = vsyncpa [#allocation9], 0 }
   0x3   :  { %14 = vsyncpa [#allocation4], 0  ;;  %s530_s21 = smov [#allocation5]   ;;  %s531_s23 = smov [#allocation2]  }
   0x4   :  { %s31_s22 = sshll.u32 %s530_s21, 4  ;;  %s21_s24 = sshll.u32 %s531_s23, 4  ;;  %s32_s22 = int_to_ptr.vmem [resolvable:$true] %s31_s22  ;;  %s22_s24 = int_to_ptr.vmem [resolvable:$true] %s21_s24 }
   0x5   :  { %s430_s25 = scalar_lea.vmem %s32_s22, 64  ;;  %p435_p1 = scmp.lt.s32.totalorder %s32_s22, %s32_s22 }
   0x6   :  { %p431_p0 = scmp.ne.s32.totalorder %s32_s22, %s430_s25  ;;  %p436_p2 = scmp.lt.s32.totalorder %s430_s25, %s430_s25 }
   0x8   :  { %p437_p3 = por %p436_p2, %p435_p1 }
   0xa   :  { %p438_p4 = pnand %p437_p3, %p431_p0 }
   0xc   :  { %441 = shalt.err (!%p438_p4)
}
   0xd   :  { %34 = dma.hbm_to_vmem [thread:$0]  %s596_s1, 64, %s32_s22, [#allocation6]  }
   0xe   :  { %s450_s28 = scalar_lea.vmem %s22_s24, 64  ;;  %p455_p6 = scmp.lt.s32.totalorder %s22_s24, %s22_s24 }
   0xf   :  { %p451_p5 = scmp.ne.s32.totalorder %s22_s24, %s450_s28  ;;  %p456_p7 = scmp.lt.s32.totalorder %s450_s28, %s450_s28 }
  0x11   :  { %p457_p8 = por %p456_p7, %p455_p6 }
  0x13   :  { %p458_p9 = pnand %p457_p8, %p451_p5 }
  0x15   :  { %461 = shalt.err (!%p458_p9)
}
  0x16   :  { %24 = dma.hbm_to_vmem [thread:$0]  %s595_s0, 64, %s22_s24, [#allocation3]  }
  0x17   :  { %s532_s7 = smov [#allocation7]  }
  0x18   :  { %s40_s8 = sshll.u32 %s532_s7, 4  ;;  %s41_s8 = int_to_ptr.vmem [resolvable:$true] %s40_s8 }
  0x19   :  { %s470_s9 = scalar_lea.vmem %s41_s8, 1024  ;;  %p475_p11 = scmp.lt.s32.totalorder %s41_s8, %s41_s8 }
  0x1a   :  { %p471_p10 = scmp.ne.s32.totalorder %s41_s8, %s470_s9  ;;  %p476_p12 = scmp.lt.s32.totalorder %s470_s9, %s470_s9 }
  0x1c   :  { %p477_p13 = por %p476_p12, %p475_p11 }
  0x1e   :  { %p478_p0 = pnand %p477_p13, %p471_p10 }
  0x20   :  { %481 = shalt.err (!%p478_p0)
}
  0x21   :  { %s533_s1 = smov 64   ;;  %s534_s10 = smov 4  }
  0x22   :  { %46 = dma.hbm_to_vmem [thread:$0]  %s597_s2, 1024, %s41_s8, [#allocation6], %s533_s1, %s533_s1, %s534_s10  }
  0x23   :  { %s535_s13 = smov [#allocation8]  }
  0x24   :  { %s54_s14 = sshll.u32 %s535_s13, 4  ;;  %s55_s14 = int_to_ptr.vmem [resolvable:$true] %s54_s14 }
  0x25   :  { %s490_s0 = scalar_lea.vmem %s55_s14, 1024  ;;  %p495_p2 = scmp.lt.s32.totalorder %s55_s14, %s55_s14 }
  0x26   :  { %p491_p1 = scmp.ne.s32.totalorder %s55_s14, %s490_s0  ;;  %p496_p3 = scmp.lt.s32.totalorder %s490_s0, %s490_s0 }
  0x28   :  { %p497_p4 = por %p496_p3, %p495_p2 }
  0x2a   :  { %p498_p5 = pnand %p497_p4, %p491_p1 }
  0x2c   :  { %501 = shalt.err (!%p498_p5)
}
  0x2d   :  { %60 = dma.hbm_to_vmem [thread:$0]  %s599_s4, 1024, %s55_s14, [#allocation9], %s533_s1, %s533_s1, %s534_s10  }
  0x2e   :  { %522 = dma.done.wait [#allocation3], 64  }
  0x2f   :  { %523 = vsyncadd [#allocation3], 4294967232 }
  0x30   :  { %524 = dma.done.wait [#allocation6], 1088  }
  0x31   :  { %525 = vsyncadd [#allocation6], 4294966208 }
  0x32   :  { %526 = dma.done.wait [#allocation9], 1024  }
  0x33   :  { %527 = vsyncadd [#allocation9], 4294966272  ;;  %v536_v0 = vmov 0.0   ;;  %vm537_vm0 = vmmov 0   ;;  %v406_v1 = vld [vmem:[#allocation7 + $0x38] sm:$0xff]   ;;  %v407_v2 = vld [vmem:[#allocation7 + $0x30] sm:$0xff]  }
  0x34   :  { %357 = vmatprep.subr.bf16.mxu0 %v536_v0  ;;  %373 = vmatprep.mubr.msk.bf16.mxu0 %vm537_vm0, %v536_v0  ;;  %v408_v3 = vld [vmem:[#allocation7 + $0x28] sm:$0xff]   ;;  %v414_v4 = vld [vmem:[#allocation8 + $0x38] sm:$0xff]   ;;  %v409_v5 = vld [vmem:[#allocation7 + $0x20] sm:$0xff]   ;;  %s538_s19 = smov [#allocation10]  }
  0x35   :  { %377 = vmatprep.subr.bf16.mxu1 %v536_v0  ;;  %393 = vmatprep.mubr.msk.bf16.mxu1 %vm537_vm0, %v536_v0  ;;  %v415_v6 = vld [vmem:[#allocation8 + $0x30] sm:$0xff]   ;;  %v410_v7 = vld [vmem:[#allocation7 + $0x18] sm:$0xff]   ;;  %v416_v8 = vld [vmem:[#allocation8 + $0x28] sm:$0xff]   ;;  %s310_s20 = sshll.u32 %s538_s19, 4  ;;  %s311_s20 = int_to_ptr.vmem [resolvable:$true] %s310_s20 }
  0x36   :  { %358 = vmatpush3.bf16.msra.mxu0 %v406_v1  ;;  %378 = vmatpush3.bf16.msra.mxu1 %v414_v4  ;;  %v411_v9 = vld [vmem:[#allocation7 + $0x10] sm:$0xff]   ;;  %v417_v10 = vld [vmem:[#allocation8 + $0x20] sm:$0xff]   ;;  %v412_v11 = vld [vmem:[#allocation7 + $0x8] sm:$0xff]   ;;  %p507_p7 = scmp.lt.s32.totalorder %s311_s20, %s311_s20 }
  0x37   :  { %359 = vmatprep.subr.bf16.mxu0 %v536_v0  ;;  %379 = vmatprep.subr.bf16.mxu1 %v536_v0  ;;  %v418_v12 = vld [vmem:[#allocation8 + $0x18] sm:$0xff]   ;;  %v413_v13 = vld [vmem:[#allocation7] sm:$0xff]   ;;  %v419_v16 = vld [vmem:[#allocation8 + $0x10] sm:$0xff]  }
  0x38   :  { %v76_v14 = vld [vmem:[#allocation2] sm:$0xf]  ;;  %v77_v15 = vld [vmem:[#allocation5] sm:$0xf]  ;;  %v420_v18 = vld [vmem:[#allocation8 + $0x8] sm:$0xff]  }
  0x39   :  { %v78_v17 = vmul.bf16 %v77_v15, %v76_v14  ;;  %v421_v19 = vld [vmem:[#allocation8] sm:$0xff]   ;;  %v321_v20 = vld [vmem:[%s598_s3] ss:$0 sm:$0xff]  ;;  %s502_s3 = scalar_lea.vmem %s311_s20, 128 }
  0x3a   :  { %360 = vmatpush3.bf16.msra.mxu0 %v407_v2  ;;  %380 = vmatpush3.bf16.msra.mxu1 %v415_v6  ;;  %v330_v28 = vld [vmem:[%s600_s5] ss:$0 sm:$0xff]  ;;  %p503_p6 = scmp.ne.s32.totalorder %s311_s20, %s502_s3  ;;  %p508_p8 = scmp.lt.s32.totalorder %s502_s3, %s502_s3 }
  0x3b   :  { %361 = vmatprep.subr.bf16.mxu0 %v536_v0  ;;  %381 = vmatprep.subr.bf16.mxu1 %v536_v0 }
  0x3c   :  { %p509_p9 = por %p508_p8, %p507_p7 }
  0x3e   :  { %362 = vmatpush3.bf16.msra.mxu0 %v408_v3  ;;  %382 = vmatpush3.bf16.msra.mxu1 %v416_v8  ;;  %p510_p10 = pnand %p509_p9, %p503_p6 }
  0x3f   :  { %363 = vmatprep.subr.bf16.mxu0 %v536_v0  ;;  %383 = vmatprep.subr.bf16.mxu1 %v536_v0 }
  0x42   :  { %364 = vmatpush3.bf16.msra.mxu0 %v409_v5  ;;  %384 = vmatpush3.bf16.msra.mxu1 %v417_v10 }
  0x43   :  { %365 = vmatprep.subr.bf16.mxu0 %v536_v0  ;;  %385 = vmatprep.subr.bf16.mxu1 %v536_v0 }
  0x46   :  { %366 = vmatpush3.bf16.msra.mxu0 %v410_v7  ;;  %386 = vmatpush3.bf16.msra.mxu1 %v418_v12 }
  0x47   :  { %367 = vmatprep.subr.bf16.mxu0 %v536_v0  ;;  %387 = vmatprep.subr.bf16.mxu1 %v536_v0 }
  0x4a   :  { %368 = vmatpush3.bf16.msra.mxu0 %v411_v9  ;;  %388 = vmatpush3.bf16.msra.mxu1 %v419_v16 }
  0x4b   :  { %369 = vmatprep.subr.bf16.mxu0 %v536_v0  ;;  %389 = vmatprep.subr.bf16.mxu1 %v536_v0 }
  0x4e   :  { %370 = vmatpush3.bf16.msra.mxu0 %v412_v11  ;;  %390 = vmatpush3.bf16.msra.mxu1 %v420_v18 }
  0x4f   :  { %371 = vmatprep.subr.bf16.mxu0 %v536_v0  ;;  %391 = vmatprep.subr.bf16.mxu1 %v536_v0 }
  0x52   :  { %372 = vmatpush3.bf16.msra.mxu0 %v413_v13  ;;  %392 = vmatpush3.bf16.msra.mxu1 %v421_v19 }
  0x55   :  { %374 = vmatmul.mubr.bf16.vlgmr.msra.gmra.mxu0 %v78_v17 }
 0x115   :  { %v184_v21 = vpop.f32.mrf.mxu0 }
 0x116   :  { %v185_v22 = vadd.f32 %v321_v20, %v184_v21 }
 0x117   :  { %v375_v23 = vpop.f32.mrf.mxu0 }
 0x118   :  { %v190_v24 = vmax.f32 %v185_v22, 0.0 }
 0x119   :  { %v187_v25 = vpop.f32.mrf.mxu0 }
 0x11a   :  { %v191_v26 = vpack.c.bf16 %v190_v24, %v190_v24 }
 0x11b   :  { %v376_v27 = vpop.f32.mrf.mxu0 }
 0x11c   :  { %394 = vmatmul.mubr.bf16.vlgmr.msra.gmra.mxu1 %v191_v26 }
 0x1dc   :  { %v297_v29 = vpop.f32.mrf.mxu1 }
 0x1dd   :  { %v298_v30 = vadd.f32 %v330_v28, %v297_v29 }
 0x1de   :  { %v395_v31 = vpop.f32.mrf.mxu1 }
 0x1df   :  { %303 = vst [vmem:[#allocation10] sm:$0xff] %v298_v30 }
 0x1e0   :  { %v300_v32 = vpop.f32.mrf.mxu1 }
 0x1e1   :  { %513 = shalt.err (!%p510_p10)
}
 0x1e2   :  { %313 = dma.vmem_to_hbm [thread:$0]  %s311_s20, 128, %s601_s6, [#allocation4]   ;;  %v396_v33 = vpop.f32.mrf.mxu1 }
 0x1e3   :  { %528 = dma.done.wait [#allocation4], 128  }
 0x1e4   :  { %529 = vsyncadd [#allocation4], 4294967168 }
 0x1e5   :  { %317 = vsyncpa [#allocation3], 1 }
 0x1e6   :  { %318 = vsyncpa [#allocation6], 1 }
 0x1e7   :  { %319 = vsyncpa [#allocation9], 1 }
 0x1e8   :  { %320 = vsyncpa [#allocation4], 1 }

</bundles_post_ra>
